<compile_context>
chip_gen: v5e
topology: v5e:2x2
jax: 0.10.0
libtpu: 0.0.40
codegen_flags: <defaults>
</compile_context>

<pallas_src>
import functools

import jax
import jax.numpy as jnp
from jax.experimental import pallas as pl
from jax.experimental.pallas import tpu as pltpu

LANES = 128
TARGET_TILE_BYTES = 4 * 1024 * 1024  # ~4 MiB per input tile


def _mape_kernel(p_ref, t_ref, sum_out, cnt_out, sum_acc, cnt_acc, *,
                 total_rows, block_rows, num_row_blocks, blocks_per_core,
                 core_splits):
    c = pl.program_id(0)   # TensorCore split ("parallel")
    i = pl.program_id(1)   # streaming reduction axis ("arbitrary")

    @pl.when(i == 0)
    def _():
        sum_acc[...] = jnp.zeros_like(sum_acc)
        cnt_acc[...] = jnp.zeros_like(cnt_acc)

    # Load in native dtype (halves HBM reads for bf16), compute in f32.
    t = t_ref[...].astype(jnp.float32)
    p = p_ref[...].astype(jnp.float32)
    mask = t != 0.0

    block_idx = c * blocks_per_core + i
    uneven_split = core_splits * blocks_per_core != num_row_blocks

    # Masks below are only emitted when statically required; at HBM roofline
    # they are free VPU filler anyway.
    if total_rows % block_rows != 0:
        # Final row block hangs past the end of the array: exclude those rows.
        loaded_block = block_idx
        if uneven_split:
            loaded_block = jnp.minimum(block_idx, num_row_blocks - 1)
        row_ids = loaded_block * block_rows + jax.lax.broadcasted_iota(
            jnp.int32, (block_rows, LANES), 0)
        mask = jnp.logical_and(mask, row_ids < total_rows)
    if uneven_split:
        # Odd block count: the clamped duplicate step contributes nothing.
        mask = jnp.logical_and(mask, block_idx < num_row_blocks)

    safe_t = jnp.where(mask, t, jnp.float32(1.0))
    rel = jnp.abs((t - p) / safe_t)           # exact divide (matches torch)
    term = jnp.where(mask, rel, jnp.float32(0.0))

    # Lane-parallel running sums (VPU); cross-lane reduce happens in the
    # wrapper on a tiny (core_splits, 1, 128) array.
    sum_acc[...] += jnp.sum(term, axis=0, keepdims=True)
    cnt_acc[...] += jnp.sum(mask.astype(jnp.int32), axis=0, keepdims=True)

    @pl.when(i == pl.num_programs(1) - 1)
    def _():
        sum_out[...] = sum_acc[...].reshape(sum_out.shape)
        cnt_out[...] = cnt_acc[...].reshape(cnt_out.shape)


def _partial_sums(p2, t2, rows):
    """Run the Pallas streaming reduction on a (rows, 128) view."""
    itemsize = max(p2.dtype.itemsize, t2.dtype.itemsize)
    max_rows = TARGET_TILE_BYTES // (LANES * itemsize)  # 8192 f32 / 16384 bf16
    block_rows = min(max_rows, rows)
    num_row_blocks = pl.cdiv(rows, block_rows)
    # 2-way TensorCore split on v7x; degenerates to a sequential loop on 1-TC.
    core_splits = 2 if num_row_blocks >= 2 else 1
    blocks_per_core = pl.cdiv(num_row_blocks, core_splits)

    if core_splits * blocks_per_core != num_row_blocks:
        def in_map(c, i):
            return (jnp.minimum(c * blocks_per_core + i, num_row_blocks - 1), 0)
    else:
        def in_map(c, i):
            return (c * blocks_per_core + i, 0)

    kernel = functools.partial(
        _mape_kernel,
        total_rows=rows,
        block_rows=block_rows,
        num_row_blocks=num_row_blocks,
        blocks_per_core=blocks_per_core,
        core_splits=core_splits,
    )

    n_elems = rows * LANES
    cost = pl.CostEstimate(
        flops=10 * n_elems,
        transcendentals=n_elems,
        bytes_accessed=n_elems * (p2.dtype.itemsize + t2.dtype.itemsize)
        + core_splits * LANES * 8,
    )

    sums, counts = pl.pallas_call(
        kernel,
        out_shape=(
            jax.ShapeDtypeStruct((core_splits, 1, LANES), jnp.float32),
            jax.ShapeDtypeStruct((core_splits, 1, LANES), jnp.int32),
        ),
        grid_spec=pltpu.PrefetchScalarGridSpec(
            num_scalar_prefetch=0,
            grid=(core_splits, blocks_per_core),
            in_specs=[
                pl.BlockSpec((block_rows, LANES), in_map),
                pl.BlockSpec((block_rows, LANES), in_map),
            ],
            out_specs=(
                pl.BlockSpec((1, 1, LANES), lambda c, i: (c, 0, 0)),
                pl.BlockSpec((1, 1, LANES), lambda c, i: (c, 0, 0)),
            ),
            scratch_shapes=[
                pltpu.VMEM((1, LANES), jnp.float32),  # running |rel err| sums
                pltpu.VMEM((1, LANES), jnp.int32),    # running nonzero counts
            ],
        ),
        compiler_params=pltpu.CompilerParams(
            dimension_semantics=("parallel", "arbitrary"),
            vmem_limit_bytes=32 * 1024 * 1024,
        ),
        cost_estimate=cost,
    )(p2, t2)
    return sums, counts


def mape_loss(y_pred, y_true):
    """Pallas MAPE loss. Inputs: matching shapes, float dtype. Output: scalar f32."""
    assert y_pred.shape == y_true.shape, (y_pred.shape, y_true.shape)
    p = y_pred.reshape(-1)
    t = y_true.reshape(-1)
    n = p.shape[0]
    if n == 0:
        return jnp.float32(jnp.nan)  # mean over an empty selection

    tail_sum = jnp.float32(0.0)
    tail_cnt = jnp.int32(0)
    rem = n % LANES
    if rem:
        if n < LANES:
            # Tiny input: pad to a single lane row; padded y_true entries are 0
            # and therefore excluded by the nonzero mask.
            pad = LANES - rem
            p = jnp.pad(p, (0, pad))
            t = jnp.pad(t, (0, pad))
        else:
            # Aligned prefix in the kernel; <=127-element tail in plain jnp
            # (no full-array pad / HBM copy).
            n_main = n - rem
            tp = p[n_main:].astype(jnp.float32)
            tt = t[n_main:].astype(jnp.float32)
            tmask = tt != 0.0
            tail_sum = jnp.sum(
                jnp.where(tmask, jnp.abs((tt - tp) / jnp.where(tmask, tt, 1.0)), 0.0))
            tail_cnt = jnp.sum(tmask.astype(jnp.int32))
            p = p[:n_main]
            t = t[:n_main]

    rows = p.shape[0] // LANES
    p2 = p.reshape(rows, LANES)
    t2 = t.reshape(rows, LANES)

    sums, counts = _partial_sums(p2, t2, rows)

    total = jnp.sum(sums) + tail_sum
    count = jnp.sum(counts) + tail_cnt
    return total / count.astype(jnp.float32)


def _reference(y_pred, y_true):
    p = y_pred.astype(jnp.float32)
    t = y_true.astype(jnp.float32)
    mask = t != 0
    vals = jnp.abs((t - p) / jnp.where(mask, t, 1.0))
    return jnp.sum(jnp.where(mask, vals, 0.0)) / jnp.sum(mask)


if __name__ == "__main__":
    key = jax.random.PRNGKey(0)
    k1, k2, k3, k4, k5, k6, k7, k8, k9 = jax.random.split(key, 9)

    # Small example consistent with the module: (batch=2, channels=4, 16x16).
    shape = (2, 4, 16, 16)
    y_pred = jax.random.normal(k1, shape, dtype=jnp.float32)
    y_true = jax.random.normal(k2, shape, dtype=jnp.float32)
    y_true = jnp.where(jax.random.bernoulli(k3, p=0.3, shape=shape), 0.0, y_true)

    loss = jax.block_until_ready(mape_loss(y_pred, y_true))
    ref = jax.block_until_ready(_reference(y_pred, y_true))
    assert jnp.allclose(loss, ref, rtol=1e-5, atol=1e-6), (loss, ref)

    # bf16 inputs exercise the native-dtype DMA path (cast to f32 in-kernel).
    loss_b = jax.block_until_ready(
        mape_loss(y_pred.astype(jnp.bfloat16), y_true.astype(jnp.bfloat16)))
    ref_b = jax.block_until_ready(
        _reference(y_pred.astype(jnp.bfloat16), y_true.astype(jnp.bfloat16)))
    assert jnp.allclose(loss_b, ref_b, rtol=1e-3, atol=1e-6), (loss_b, ref_b)

    # Non-128-aligned case: aligned prefix in-kernel + jnp tail fold-in.
    shape2 = (300, 1001)  # 300300 elements -> prefix rows=2346, tail of 12
    yp2 = jax.random.normal(k4, shape2, dtype=jnp.float32)
    yt2 = jax.random.normal(k5, shape2, dtype=jnp.float32)
    yt2 = jnp.where(jax.random.bernoulli(k6, p=0.25, shape=shape2), 0.0, yt2)
    loss2 = jax.block_until_ready(mape_loss(yp2, yt2))
    ref2 = jax.block_until_ready(_reference(yp2, yt2))
    assert jnp.allclose(loss2, ref2, rtol=1e-3, atol=1e-6), (loss2, ref2)

    # Multi-block + 2-core-split path with an uneven split and a partial last
    # row block (rows=16484 -> 3 blocks of 8192, grid=(2,2), one clamped step).
    shape3 = (16484, 128)
    yp3 = jax.random.normal(k7, shape3, dtype=jnp.float32)
    yt3 = jax.random.uniform(k8, shape3, dtype=jnp.float32,
                             minval=0.5, maxval=1.5)
    yt3 = jnp.where(jax.random.bernoulli(k9, p=0.25, shape=shape3), 0.0, yt3)
    loss3 = jax.block_until_ready(mape_loss(yp3, yt3))
    ref3 = jax.block_until_ready(_reference(yp3, yt3))
    assert jnp.allclose(loss3, ref3, rtol=1e-3, atol=1e-6), (loss3, ref3)

    print("KERNEL_OK")
</pallas_src>

<mosaic_0001>
module attributes {stable_mosaic.version = 11 : i64} {
  func.func @_mape_kernel(%arg0: i32, %arg1: i32, %arg2: memref<16x128xf32, #tpu.memory_space<vmem>>, %arg3: memref<16x128xf32, #tpu.memory_space<vmem>>, %arg4: memref<1x1x128xf32, #tpu.memory_space<vmem>>, %arg5: memref<1x1x128xi32, #tpu.memory_space<vmem>>, %arg6: memref<1x128xf32, #tpu.memory_space<vmem>>, %arg7: memref<1x128xi32, #tpu.memory_space<vmem>>) attributes {dimension_semantics = [#tpu.dimension_semantics<parallel>, #tpu.dimension_semantics<arbitrary>], iteration_bounds = array<i64: 1, 1>, scalar_prefetch = 0 : i64, scratch_operands = 2 : i64, tpu.core_type = #tpu.core_type<tc>, window_params = [{transform_indices = @transform_0, window_bounds = array<i64: 16, 128>}, {transform_indices = @transform_1, window_bounds = array<i64: 16, 128>}, {transform_indices = @transform_2, window_bounds = array<i64: 1, 1, 128>}, {transform_indices = @transform_3, window_bounds = array<i64: 1, 1, 128>}]} {
    %c0_i32 = arith.constant 0 : i32
    %0 = arith.cmpi eq, %arg1, %c0_i32 : i32
    %1 = arith.extui %0 : i1 to i32
    %c0_i32_0 = arith.constant 0 : i32
    %2 = arith.cmpi ne, %1, %c0_i32_0 : i32
    scf.if %2 {
      %cst_18 = arith.constant 0.000000e+00 : f32
      %28 = vector.broadcast %cst_18 : f32 to vector<1x128xf32>
      %c0_19 = arith.constant 0 : index
      %c0_20 = arith.constant 0 : index
      %29 = vector.load %arg6[%c0_19, %c0_20] : memref<1x128xf32, #tpu.memory_space<vmem>>, vector<1x128xf32>
      tpu.vector_store %arg6[%c0_19, %c0_20], %28 {strides = array<i32>} : memref<1x128xf32, #tpu.memory_space<vmem>>, vector<1x128xf32>,
      %c0_i32_21 = arith.constant 0 : i32
      %30 = vector.broadcast %c0_i32_21 : i32 to vector<1x128xi32>
      %c0_22 = arith.constant 0 : index
      %c0_23 = arith.constant 0 : index
      %31 = vector.load %arg7[%c0_22, %c0_23] : memref<1x128xi32, #tpu.memory_space<vmem>>, vector<1x128xi32>
      tpu.vector_store %arg7[%c0_22, %c0_23], %30 {strides = array<i32>} : memref<1x128xi32, #tpu.memory_space<vmem>>, vector<1x128xi32>,
    } else {
    }
    %c0 = arith.constant 0 : index
    %c0_1 = arith.constant 0 : index
    %3 = vector.load %arg3[%c0, %c0_1] : memref<16x128xf32, #tpu.memory_space<vmem>>, vector<16x128xf32>
    %c0_2 = arith.constant 0 : index
    %c0_3 = arith.constant 0 : index
    %4 = vector.load %arg2[%c0_2, %c0_3] : memref<16x128xf32, #tpu.memory_space<vmem>>, vector<16x128xf32>
    %cst = arith.constant 0.000000e+00 : f32
    %5 = vector.broadcast %cst : f32 to vector<16x128xf32>
    %6 = arith.cmpf one, %3, %5 : vector<16x128xf32>
    %cst_4 = arith.constant 1.000000e+00 : f32
    %7 = vector.broadcast %cst_4 : f32 to vector<16x128xf32>
    %8 = arith.select %6, %3, %7 : vector<16x128xi1>, vector<16x128xf32>
    %9 = arith.subf %3, %4 : vector<16x128xf32>
    %10 = arith.divf %9, %8 : vector<16x128xf32>
    %11 = math.absf %10 : vector<16x128xf32>
    %cst_5 = arith.constant 0.000000e+00 : f32
    %12 = vector.broadcast %cst_5 : f32 to vector<16x128xf32>
    %13 = arith.select %6, %11, %12 : vector<16x128xi1>, vector<16x128xf32>
    %c0_6 = arith.constant 0 : index
    %c0_7 = arith.constant 0 : index
    %14 = vector.load %arg6[%c0_6, %c0_7] : memref<1x128xf32, #tpu.memory_space<vmem>>, vector<1x128xf32>
    %cst_8 = arith.constant dense<0.000000e+00> : vector<128xf32>
    %15 = vector.multi_reduction <add>, %13, %cst_8 [0] : vector<16x128xf32> to vector<128xf32>
    %16 = vector.shape_cast %15 : vector<128xf32> to vector<1x128xf32>
    %17 = arith.addf %14, %16 : vector<1x128xf32>
    %c0_9 = arith.constant 0 : index
    %c0_10 = arith.constant 0 : index
    %18 = vector.load %arg6[%c0_9, %c0_10] : memref<1x128xf32, #tpu.memory_space<vmem>>, vector<1x128xf32>
    tpu.vector_store %arg6[%c0_9, %c0_10], %17 {strides = array<i32>} : memref<1x128xf32, #tpu.memory_space<vmem>>, vector<1x128xf32>,
    %c0_11 = arith.constant 0 : index
    %c0_12 = arith.constant 0 : index
    %19 = vector.load %arg7[%c0_11, %c0_12] : memref<1x128xi32, #tpu.memory_space<vmem>>, vector<1x128xi32>
    %20 = arith.extui %6 : vector<16x128xi1> to vector<16x128xi32>
    %cst_13 = arith.constant dense<0> : vector<128xi32>
    %21 = vector.multi_reduction <add>, %20, %cst_13 [0] : vector<16x128xi32> to vector<128xi32>
    %22 = vector.shape_cast %21 : vector<128xi32> to vector<1x128xi32>
    %23 = arith.addi %19, %22 : vector<1x128xi32>
    %c0_14 = arith.constant 0 : index
    %c0_15 = arith.constant 0 : index
    %24 = vector.load %arg7[%c0_14, %c0_15] : memref<1x128xi32, #tpu.memory_space<vmem>>, vector<1x128xi32>
    tpu.vector_store %arg7[%c0_14, %c0_15], %23 {strides = array<i32>} : memref<1x128xi32, #tpu.memory_space<vmem>>, vector<1x128xi32>,
    %c0_i32_16 = arith.constant 0 : i32
    %25 = arith.cmpi eq, %arg1, %c0_i32_16 : i32
    %26 = arith.extui %25 : i1 to i32
    %c0_i32_17 = arith.constant 0 : i32
    %27 = arith.cmpi ne, %26, %c0_i32_17 : i32
    scf.if %27 {
      %c0_18 = arith.constant 0 : index
      %c0_19 = arith.constant 0 : index
      %28 = vector.load %arg6[%c0_18, %c0_19] : memref<1x128xf32, #tpu.memory_space<vmem>>, vector<1x128xf32>
      %29 = vector.shape_cast %28 : vector<1x128xf32> to vector<1x1x128xf32>
      %c0_20 = arith.constant 0 : index
      %c0_21 = arith.constant 0 : index
      %c0_22 = arith.constant 0 : index
      %30 = vector.load %arg4[%c0_20, %c0_21, %c0_22] : memref<1x1x128xf32, #tpu.memory_space<vmem>>, vector<1x1x128xf32>
      tpu.vector_store %arg4[%c0_20, %c0_21, %c0_22], %29 {strides = array<i32>} : memref<1x1x128xf32, #tpu.memory_space<vmem>>, vector<1x1x128xf32>,
      %c0_23 = arith.constant 0 : index
      %c0_24 = arith.constant 0 : index
      %31 = vector.load %arg7[%c0_23, %c0_24] : memref<1x128xi32, #tpu.memory_space<vmem>>, vector<1x128xi32>
      %32 = vector.shape_cast %31 : vector<1x128xi32> to vector<1x1x128xi32>
      %c0_25 = arith.constant 0 : index
      %c0_26 = arith.constant 0 : index
      %c0_27 = arith.constant 0 : index
      %33 = vector.load %arg5[%c0_25, %c0_26, %c0_27] : memref<1x1x128xi32, #tpu.memory_space<vmem>>, vector<1x1x128xi32>
      tpu.vector_store %arg5[%c0_25, %c0_26, %c0_27], %32 {strides = array<i32>} : memref<1x1x128xi32, #tpu.memory_space<vmem>>, vector<1x1x128xi32>,
    } else {
    }
    return
  }
  func.func @transform_0(%arg0: i32, %arg1: i32) -> (i32, i32) {
    %c1_i32 = arith.constant 1 : i32
    %0 = arith.muli %arg0, %c1_i32 : i32
    %1 = arith.addi %0, %arg1 : i32
    %c0_i32 = arith.constant 0 : i32
    %c0_i32_0 = arith.constant 0 : i32
    return %1, %c0_i32 : i32, i32
  }
  func.func @transform_1(%arg0: i32, %arg1: i32) -> (i32, i32) {
    %c1_i32 = arith.constant 1 : i32
    %0 = arith.muli %arg0, %c1_i32 : i32
    %1 = arith.addi %0, %arg1 : i32
    %c0_i32 = arith.constant 0 : i32
    %c0_i32_0 = arith.constant 0 : i32
    return %1, %c0_i32 : i32, i32
  }
  func.func @transform_2(%arg0: i32, %arg1: i32) -> (i32, i32, i32) {
    %c0_i32 = arith.constant 0 : i32
    %c0_i32_0 = arith.constant 0 : i32
    %c0_i32_1 = arith.constant 0 : i32
    return %arg0, %c0_i32, %c0_i32_0 : i32, i32, i32
  }
  func.func @transform_3(%arg0: i32, %arg1: i32) -> (i32, i32, i32) {
    %c0_i32 = arith.constant 0 : i32
    %c0_i32_0 = arith.constant 0 : i32
    %c0_i32_1 = arith.constant 0 : i32
    return %arg0, %c0_i32, %c0_i32_0 : i32, i32, i32
  }
}

</mosaic_0001>

<bundles_post_ra>
// kernel: tpu_custom_call.1
= control target key start
LH: loop header
LB: loop body
LE: loop exit
PB: predicated region body
PF: predicated region fallthrough
CT: control target
= control target key end

     0   :  { %9 = vsyncpa [#allocation5], 0  ;;  %s335_s0 = inlined_call_operand.hbm [shape: f32[16,128], index: 0, kind: input, shape index: {}]   ;;  %s336_s1 = inlined_call_operand.hbm [shape: f32[16,128], index: 1, kind: input, shape index: {}]   ;;  %s337_s2 = inlined_call_operand.hbm [shape: f32[1,1,128], index: 2, kind: output, shape index: {0}]   ;;  %s338_s3 = inlined_call_operand.hbm [shape: s32[1,1,128], index: 3, kind: output, shape index: {1}]  }
   0x1   :  { %10 = vsyncpa [#allocation8], 0 }
   0x2   :  { %11 = vsyncpa [#allocation6], 0 }
   0x3   :  { %12 = vsyncpa [#allocation11], 0  ;;  %s21_s14 = sshll.u32 %s335_s0, 4  ;;  %s288_s15 = smov [#allocation4]   ;;  %s22_s14 = int_to_ptr.hbm [resolvable:$true] %s21_s14 }
   0x4   :  { %s23_s16 = sshll.u32 %s288_s15, 4  ;;  %s38_s19 = sshll.u32 %s336_s1, 4  ;;  %s24_s16 = int_to_ptr.vmem [resolvable:$true] %s23_s16  ;;  %s39_s19 = int_to_ptr.hbm [resolvable:$true] %s38_s19 }
   0x5   :  { %s289_s20 = smov 128   ;;  %s290_s21 = smov 8  }
   0x6   :  { %29 = dma.hbm_to_vmem [thread:$0]  %s22_s14, 256, %s24_s16, [#allocation5], %s289_s20, %s289_s20, %s290_s21  }
   0x7   :  { %s291_s22 = smov [#allocation7]  }
   0x8   :  { %s40_s23 = sshll.u32 %s291_s22, 4  ;;  %s41_s23 = int_to_ptr.vmem [resolvable:$true] %s40_s23 }
   0x9   :  { %46 = dma.hbm_to_vmem [thread:$0]  %s39_s19, 256, %s41_s23, [#allocation8], %s289_s20, %s289_s20, %s290_s21  }
   0xa   :  { %280 = dma.done.wait [#allocation5], 256  }
   0xb   :  { %281 = vsyncadd [#allocation5], 4294967040 }
   0xc   :  { %282 = dma.done.wait [#allocation8], 256  }
   0xd   :  { %283 = vsyncadd [#allocation8], 4294967040  ;;  %v292_v0 = vmov 0.0   ;;  %v293_v1 = vmov 0   ;;  %v65_v2 = vld [vmem:[#allocation7] sm:$0xff]  ;;  %v66_v3 = vld [vmem:[#allocation7 + $0x8] sm:$0xff] }
   0xe   :  { %63 = vst [vmem:[#allocation2] sm:$0x1] %v292_v0  ;;  %vm69_vm0 = vcmp.ne.f32.partialorder %v65_v2, 0.0  ;;  %vm70_vm1 = vcmp.ne.f32.partialorder %v66_v3, 0.0  ;;  %v67_v17 = vld [vmem:[#allocation4] sm:$0xff]  ;;  %v68_v23 = vld [vmem:[#allocation4 + $0x8] sm:$0xff] }
   0xf   :  { %64 = vst [vmem:[#allocation3] sm:$0x1] %v293_v1  ;;  %v71_v4 = vsel %vm69_vm0, %v65_v2, 1.0  ;;  %v72_v5 = vsel %vm70_vm1, %v66_v3, 1.0  ;;  %v120_v6 = vsel %vm69_vm0, 1, %v293_v1  ;;  %v121_v7 = vsel %vm70_vm1, 1, %v293_v1 }
  0x10   :  { %180 = vrcp.f32 %v71_v4  ;;  %v122_v8 = vadd.s32 %v121_v7, %v120_v6  ;;  %vm80_vm2 = vweird.f32 %v71_v4  ;;  %v84_v14 = vand.u32 2147483647, %v71_v4  ;;  %s294_s0 = smov [#allocation10]   ;;  %s156_s26 = sshll.u32 %s338_s3, 4  ;;  %s157_s26 = int_to_ptr.hbm [resolvable:$true] %s156_s26 }
  0x11   :  { %182 = vrcp.f32 %v72_v5  ;;  %v86_v15 = vand.u32 2147483648, %v71_v4  ;;  %v101_v19 = vand.u32 2147483648, %v72_v5  ;;  %vm95_vm4 = vweird.f32 %v72_v5  ;;  %s154_s1 = sshll.u32 %s294_s0, 4  ;;  %s295_s27 = smov [#allocation9]   ;;  %s155_s1 = int_to_ptr.vmem [resolvable:$true] %s154_s1 }
  0x12   :  { %v123_v9 = vrot.slane %v122_v8, 4  ;;  %v99_v22 = vand.u32 2147483647, %v72_v5  ;;  %v73_v26 = vsub.f32 %v65_v2, %v67_v17  ;;  %vm85_vm7 = vcmp.eq.f32.partialorder %v84_v14, 8.507059e+37  ;;  %s143_s28 = sshll.u32 %s295_s27, 4  ;;  %s145_s3 = sshll.u32 %s337_s2, 4  ;;  %s144_s28 = int_to_ptr.vmem [resolvable:$true] %s143_s28  ;;  %s146_s3 = int_to_ptr.hbm [resolvable:$true] %s145_s3 }
  0x13   :  { %v87_v27 = vor.u32 1.1754944e-38, %v86_v15  ;;  %v102_v30 = vor.u32 1.1754944e-38, %v101_v19  ;;  %v74_v32 = vsub.f32 %v66_v3, %v68_v23 }
  0x14   :  { %v124_v13 = vadd.s32 %v123_v9, %v122_v8  ;;  %vm100_vm9 = vcmp.eq.f32.partialorder %v99_v22, 8.507059e+37 }
  0x15   :  { %v109_v54 = vld [vmem:[#allocation2] sm:$0x1] }
  0x16   :  { %v181_v10 = vpop.eup %180  ;;  %v125_v20 = vrot.slane %v124_v13, 2  ;;  %v119_v34 = vld [vmem:[#allocation3] sm:$0x1] }
  0x17   :  { %v183_v11 = vpop.eup %182  ;;  %v76_v12 = vmul.f32 %v181_v10, %v71_v4  ;;  %vm81_vm3 = vweird.f32 %v181_v10 }
  0x18   :  { %v91_v16 = vmul.f32 %v183_v11, %v72_v5  ;;  %vm96_vm5 = vweird.f32 %v183_v11  ;;  %v126_v25 = vadd.s32 %v125_v20, %v124_v13  ;;  %vm82_vm6 = vmor %vm80_vm2, %vm81_vm3 }
  0x19   :  { %v77_v18 = vsub.f32 1.0, %v76_v12  ;;  %vm97_vm8 = vmor %vm95_vm4, %vm96_vm5 }
  0x1a   :  { %v92_v21 = vsub.f32 1.0, %v91_v16  ;;  %v127_v31 = vrot.slane %v126_v25, 1 }
  0x1b   :  { %v78_v24 = vmul.f32 %v181_v10, %v77_v18 }
  0x1c   :  { %v93_v28 = vmul.f32 %v183_v11, %v92_v21  ;;  %v128_v36 = vadd.s32 %v127_v31, %v126_v25 }
  0x1d   :  { %v79_v29 = vadd.f32 %v181_v10, %v78_v24 }
  0x1e   :  { %v94_v33 = vadd.f32 %v183_v11, %v93_v28  ;;  %v129_v41 = vadd.s32 %v128_v36, %v119_v34 }
  0x1f   :  { %v83_v35 = vsel %vm82_vm6, %v181_v10, %v79_v29 }
  0x20   :  { %v88_v37 = vsel %vm85_vm7, %v87_v27, %v83_v35  ;;  %v98_v38 = vsel %vm97_vm8, %v183_v11, %v94_v33  ;;  %130 = vst [vmem:[#allocation3] sm:$0x1] %v129_v41 }
  0x21   :  { %v89_v39 = vmul.f32 %v88_v37, %v73_v26  ;;  %v103_v40 = vsel %vm100_vm9, %v102_v30, %v98_v38 }
  0x22   :  { %v104_v42 = vmul.f32 %v103_v40, %v74_v32 }
  0x23   :  { %v105_v43 = vand.u32 2147483647, %v89_v39 }
  0x24   :  { %v106_v44 = vand.u32 2147483647, %v104_v42 }
  0x25   :  { %v107_v45 = vsel %vm69_vm0, %v105_v43, 0.0 }
  0x26   :  { %v108_v46 = vsel %vm70_vm1, %v106_v44, 0.0 }
  0x27   :  { %v110_v47 = vadd.f32 %v108_v46, %v107_v45  ;;  %v136_v49 = vld [vmem:[#allocation3] sm:$0x1] }
  0x28   :  { %137 = vst [vmem:[#allocation10] sm:$0x1] %v136_v49 }
  0x29   :  { %v111_v48 = vrot.slane %v110_v47, 4  ;;  %159 = dma.vmem_to_hbm [thread:$0]  %s155_s1, 16, %s157_s26, [#allocation11]  }
  0x2b   :  { %v112_v50 = vadd.f32 %v111_v48, %v110_v47 }
  0x2d   :  { %v113_v51 = vrot.slane %v112_v50, 2 }
  0x2f   :  { %v114_v52 = vadd.f32 %v113_v51, %v112_v50 }
  0x31   :  { %v115_v53 = vrot.slane %v114_v52, 1 }
  0x33   :  { %v116_v55 = vadd.f32 %v115_v53, %v114_v52 }
  0x35   :  { %v117_v56 = vadd.f32 %v116_v55, %v109_v54 }
  0x37   :  { %118 = vst [vmem:[#allocation2] sm:$0x1] %v117_v56 }
  0x3e   :  { %v134_v57 = vld [vmem:[#allocation2] sm:$0x1] }
  0x3f   :  { %135 = vst [vmem:[#allocation9] sm:$0x1] %v134_v57 }
  0x40   :  { %148 = dma.vmem_to_hbm [thread:$0]  %s144_s28, 16, %s146_s3, [#allocation6]  }
  0x41   :  { %284 = dma.done.wait [#allocation6], 16  }
  0x42   :  { %285 = vsyncadd [#allocation6], 4294967280 }
  0x43   :  { %286 = dma.done.wait [#allocation11], 16  }
  0x44   :  { %287 = vsyncadd [#allocation11], 4294967280 }
  0x45   :  { %168 = vsyncpa [#allocation5], 1 }
  0x46   :  { %169 = vsyncpa [#allocation8], 1 }
  0x47   :  { %170 = vsyncpa [#allocation6], 1 }
  0x48   :  { %171 = vsyncpa [#allocation11], 1 }

</bundles_post_ra>
